<compile_context>
chip_gen: v7x
topology: tpu7x:2x2x1
jax: 0.10.0
libtpu: 0.0.40
codegen_flags: <defaults>
</compile_context>

<pallas_src>
import functools

import jax
import jax.numpy as jnp
from jax import lax
from jax.experimental import pallas as pl
from jax.experimental.pallas import tpu as pltpu


_LANE = 128
_DEFAULT_FEED_DTYPE = jnp.bfloat16   # MXU feed dtype for f32 inputs
_MAX_TK_CAP = 8192                   # lanes per HW tile (multiple of 128)
_TILE_BYTES_CAP = 8 << 20            # ~8 MiB per F tile target


def _cdiv(a, b):
    return (a + b - 1) // b


def _round_up(x, m):
    return ((x + m - 1) // m) * m


def _tpu_vmem_bytes():
    """Physical VMEM of the attached TPU generation (conservative fallback)."""
    try:
        info = pltpu.get_tpu_info()
        vmem = getattr(info, "vmem_capacity_bytes", None)
        if vmem:
            return int(vmem)
    except Exception:
        pass
    return 64 << 20  # v7x-level (smallest current generation)


def _resolve_feed_dtype(in_dtype, feed_dtype):
    """MXU feed dtype: only narrow (e.g. f32 -> bf16); never upcast."""
    if feed_dtype is None:
        return None
    feed = jnp.dtype(feed_dtype)
    if jnp.dtype(in_dtype).itemsize <= feed.itemsize:
        return None
    return feed


def _pick_tiling(c, hw, itemsize, max_tk=None):
    """Generation-aware HW-tile width (lanes) + desired input buffer depth."""
    hw128 = _round_up(hw, _LANE)
    vmem = _tpu_vmem_bytes()
    n_buf = 3 if c <= 128 else 2          # deeper pipelining for mem-bound small C
    f_budget = int(vmem * 0.35)           # buffered F tiles + in-kernel temporaries
    tk = f_budget // ((n_buf + 1) * c * itemsize)
    tk = min(tk, _TILE_BYTES_CAP // (c * itemsize), _MAX_TK_CAP)
    if max_tk is not None:
        tk = min(tk, max_tk)
    tk = max(_LANE, (tk // _LANE) * _LANE)
    tk = min(tk, hw128)
    num_k = _cdiv(hw, tk)
    return tk, num_k, n_buf


def _vmem_limit_bytes(c, tk, itemsize, n_buf):
    tile = c * tk * itemsize
    raw = (n_buf + 1) * tile + 3 * c * c * 4 + 2 * _LANE * 4
    limit = int(raw * 1.4) + (4 << 20)
    phys = _tpu_vmem_bytes()
    return int(min(max(limit, 32 << 20), int(phys * 0.9)))


def _f_block_spec(c, tk, index_map, n_buf):
    """F-tile BlockSpec, with deeper multi-buffering when requested."""
    if n_buf > 2:
        try:
            return pl.BlockSpec((1, c, tk), index_map,
                                pipeline_mode=pl.Buffered(n_buf))
        except Exception:  # older jax without pipeline_mode / Buffered
            pass
    return pl.BlockSpec((1, c, tk), index_map)


def _use_triangle(c):
    # Upper-triangle Gram pays off where the kernel is MXU-bound (large C).
    return c >= 256 and c % _LANE == 0


def _auto_splits(n, num_k, num_splits):
    if num_splits is None:
        # Split the HW range across the two v7x TensorCores for batch-1 inputs
        # (negligible cost on single-TensorCore v5e/v6e).
        num_splits = 2 if (n == 1 and num_k >= 2) else 1
    return max(1, min(num_splits, num_k))


# ---------------------------------------------------------------------------
# Shared per-tile Gram accumulation
# ---------------------------------------------------------------------------
def _accumulate_gram(f_ref, acc_ref, gk, overwrite, *, tk, hw, feed_dtype,
                     precision, triangle, nb):
    """acc (+)= F_tile @ F_tile^T for the HW tile `gk` (ragged tail masked)."""
    rem = hw % tk
    limit = (hw - gk * tk) if rem else None        # valid lanes in this tile
    dot_kwargs = {} if precision is None else {"precision": precision}
    dn = (((1,), (1,)), ((), ()))                  # contract last dims: F @ F^T

    def load(rows):
        x = f_ref[0, rows, :]
        if feed_dtype is not None and x.dtype != feed_dtype:
            x = x.astype(feed_dtype)               # in-kernel cast: 1-pass MXU feed
        if limit is not None:                      # zero out-of-range tail lanes
            lane = lax.broadcasted_iota(jnp.int32, x.shape, 1)
            x = jnp.where(lane < limit, x, jnp.zeros_like(x))
        return x

    def write(sl, val):
        if overwrite:                              # first tile: skip zero-init RMW
            acc_ref[sl] = val
        else:
            acc_ref[sl] += val

    if not triangle:
        x = load(slice(None))
        write((slice(None), slice(None)),
              lax.dot_general(x, x, dn, preferred_element_type=jnp.float32,
                              **dot_kwargs))
    else:
        blocks = [load(slice(bi * _LANE, (bi + 1) * _LANE)) for bi in range(nb)]
        for bi in range(nb):
            for bj in range(bi, nb):               # Gram symmetry: j >= i only
                val = lax.dot_general(blocks[bi], blocks[bj], dn,
                                      preferred_element_type=jnp.float32,
                                      **dot_kwargs)
                write((slice(bi * _LANE, (bi + 1) * _LANE),
                       slice(bj * _LANE, (bj + 1) * _LANE)), val)


# ---------------------------------------------------------------------------
# Kernel 1: Gram matrix G[b] = F[b] @ F[b]^T, grid (split s, batch b, HW tile k)
# ---------------------------------------------------------------------------
def _make_gram_kernel(*, num_k, kps, tk, hw, feed_dtype, precision, triangle, nb):
    def kernel(f_ref, g_ref, acc_ref):
        s = pl.program_id(0)          # split-K (dual TensorCore) index
        k = pl.program_id(2)          # local HW-tile index within this split
        gk = s * kps + k              # global HW-tile index

        accum = functools.partial(
            _accumulate_gram, f_ref, acc_ref, gk,
            tk=tk, hw=hw, feed_dtype=feed_dtype, precision=precision,
            triangle=triangle, nb=nb)

        @pl.when(k == 0)
        def _():
            accum(True)               # first tile of this split: direct write

        @pl.when(jnp.logical_and(k > 0, gk < num_k))
        def _():
            accum(False)              # later (valid) tiles: accumulate

        @pl.when(k == kps - 1)
        def _():
            if triangle:
                for bi in range(nb):
                    ri = slice(bi * _LANE, (bi + 1) * _LANE)
                    for bj in range(bi, nb):
                        rj = slice(bj * _LANE, (bj + 1) * _LANE)
                        blk = acc_ref[ri, rj]
                        g_ref[0, 0, ri, rj] = blk
                        if bj > bi:
                            g_ref[0, 0, rj, ri] = blk.T   # mirror lower triangle
            else:
                g_ref[0, 0] = acc_ref[...]

    return kernel


def gram_matrix_pallas(features_nchw, *, feed_dtype=_DEFAULT_FEED_DTYPE,
                       precision=None, max_tk=None, num_splits=None):
    """features_nchw: (N, C, H, W) -> Gram (N, C, C) float32 (F @ F^T per batch)."""
    n, c, h, w = features_nchw.shape
    hw = h * w
    f = features_nchw.reshape(n, c, hw)   # no padding: tail masked in-kernel
    itemsize = jnp.dtype(f.dtype).itemsize
    tk, num_k, n_buf = _pick_tiling(c, hw, itemsize, max_tk)
    num_splits = _auto_splits(n, num_k, num_splits)
    kps = _cdiv(num_k, num_splits)
    n_buf = n_buf if kps >= n_buf else 2
    feed = _resolve_feed_dtype(f.dtype, feed_dtype)
    triangle = _use_triangle(c)
    nb = c // _LANE if triangle else 1

    kernel = _make_gram_kernel(num_k=num_k, kps=kps, tk=tk, hw=hw,
                               feed_dtype=feed, precision=precision,
                               triangle=triangle, nb=nb)

    out = pl.pallas_call(
        kernel,
        out_shape=jax.ShapeDtypeStruct((num_splits, n, c, c), jnp.float32),
        grid_spec=pltpu.PrefetchScalarGridSpec(
            num_scalar_prefetch=0,
            grid=(num_splits, n, kps),
            in_specs=[_f_block_spec(
                c, tk,
                lambda s, b, k: (b, 0, jnp.minimum(s * kps + k, num_k - 1)),
                n_buf)],
            out_specs=pl.BlockSpec((1, 1, c, c), lambda s, b, k: (s, b, 0, 0)),
            scratch_shapes=[pltpu.VMEM((c, c), jnp.float32)],
        ),
        compiler_params=pltpu.CompilerParams(
            dimension_semantics=("parallel", "parallel", "arbitrary"),
            vmem_limit_bytes=_vmem_limit_bytes(c, tk, itemsize, n_buf)),
    )(f)

    if num_splits == 1:
        return out[0]
    return jnp.sum(out, axis=0)       # tiny cross-core partial-Gram sum


# ---------------------------------------------------------------------------
# Kernel 2 (fused hot path): per-batch  sum_{i,j} (F F^T - G_target)^2
# ---------------------------------------------------------------------------
def _make_loss_kernel(*, num_k, tk, hw, feed_dtype, precision, triangle, nb):
    def kernel(f_ref, gt_ref, out_ref, acc_ref):
        k = pl.program_id(1)

        accum = functools.partial(
            _accumulate_gram, f_ref, acc_ref, k,
            tk=tk, hw=hw, feed_dtype=feed_dtype, precision=precision,
            triangle=triangle, nb=nb)

        @pl.when(k == 0)
        def _():
            accum(True)

        @pl.when(k > 0)
        def _():
            accum(False)

        @pl.when(k == num_k - 1)
        def _():
            if triangle:
                total = jnp.float32(0.0)
                for bi in range(nb):
                    ri = slice(bi * _LANE, (bi + 1) * _LANE)
                    for bj in range(bi, nb):
                        rj = slice(bj * _LANE, (bj + 1) * _LANE)
                        d = acc_ref[ri, rj] - gt_ref[0, ri, rj]
                        blk = jnp.sum(d * d)
                        total = total + (blk if bi == bj else 2.0 * blk)
            else:
                d = acc_ref[...] - gt_ref[0]
                total = jnp.sum(d * d)
            out_ref[...] = jnp.broadcast_to(total, out_ref.shape)  # lane-dense

    return kernel


def style_layer_loss_pallas(features_nchw, gram_target, *,
                            feed_dtype=_DEFAULT_FEED_DTYPE, precision=None,
                            max_tk=None, num_splits=None):
    """Mean((gram(features) - gram_target)**2) over (N, C, C) for one layer."""
    n, c, h, w = features_nchw.shape
    hw = h * w
    f = features_nchw.reshape(n, c, hw)
    itemsize = jnp.dtype(f.dtype).itemsize
    tk, num_k, n_buf = _pick_tiling(c, hw, itemsize, max_tk)
    num_splits = _auto_splits(n, num_k, num_splits)
    gt = gram_target.astype(jnp.float32)
    denom = jnp.float32(n * c * c)

    if num_splits > 1:
        # Batch-1 split-K: each TensorCore builds a partial Gram; the tiny
        # (N, C, C) diff^2 epilogue runs in plain JAX.
        gram = gram_matrix_pallas(features_nchw, feed_dtype=feed_dtype,
                                  precision=precision, max_tk=max_tk,
                                  num_splits=num_splits)
        d = gram - gt
        return jnp.sum(d * d) / denom

    n_buf = n_buf if num_k >= n_buf else 2
    feed = _resolve_feed_dtype(f.dtype, feed_dtype)
    triangle = _use_triangle(c)
    nb = c // _LANE if triangle else 1

    kernel = _make_loss_kernel(num_k=num_k, tk=tk, hw=hw, feed_dtype=feed,
                               precision=precision, triangle=triangle, nb=nb)

    partial = pl.pallas_call(
        kernel,
        out_shape=jax.ShapeDtypeStruct((n, 1, _LANE), jnp.float32),
        grid_spec=pltpu.PrefetchScalarGridSpec(
            num_scalar_prefetch=0,
            grid=(n, num_k),
            in_specs=[
                _f_block_spec(c, tk, lambda b, k: (b, 0, k), n_buf),
                pl.BlockSpec((1, c, c), lambda b, k: (b, 0, 0)),
            ],
            out_specs=pl.BlockSpec((1, 1, _LANE), lambda b, k: (b, 0, 0)),
            scratch_shapes=[pltpu.VMEM((c, c), jnp.float32)],
        ),
        compiler_params=pltpu.CompilerParams(
            dimension_semantics=("parallel", "arbitrary"),
            vmem_limit_bytes=_vmem_limit_bytes(c, tk, itemsize, n_buf)),
    )(f, gt)

    # torch.mean over the (N, C, C) delta: tiny cross-batch sum in plain JAX.
    return jnp.sum(partial[:, 0, 0]) / denom


# ---------------------------------------------------------------------------
# StyleLoss module equivalent
# ---------------------------------------------------------------------------
class StyleLossPallas:
    def __init__(self, features, *, feed_dtype=_DEFAULT_FEED_DTYPE,
                 precision=None, max_tk=None):
        # feed_dtype=bf16 keeps f32 accumulation but feeds the MXU in bf16;
        # pass feed_dtype=None (and optionally precision=lax.Precision.HIGHEST)
        # for bit-level parity with an exact-f32 reference.
        self.feed_dtype = feed_dtype
        self.precision = precision
        self.max_tk = max_tk
        self.features_list = features
        # Precompute target Gram matrices (same as the PyTorch __init__).
        self.gram_matrix_list = [
            gram_matrix_pallas(f, feed_dtype=feed_dtype, precision=precision,
                               max_tk=max_tk)
            for f in features]

    def __call__(self, style_current):
        style_loss = jnp.float32(0.0)
        for idx in range(len(self.gram_matrix_list)):
            style_loss = style_loss + style_layer_loss_pallas(
                style_current[idx], self.gram_matrix_list[idx],
                feed_dtype=self.feed_dtype, precision=self.precision,
                max_tk=self.max_tk)
        return style_loss


# ---------------------------------------------------------------------------
# Pure-JAX reference (for sanity checks)
# ---------------------------------------------------------------------------
def _gram_ref(features, feed_dtype=None):
    n, c, h, w = features.shape
    fv = features.reshape(n, c, h * w)
    if feed_dtype is not None:
        fv = fv.astype(feed_dtype)      # emulate the MXU feed rounding
    fv = fv.astype(jnp.float32)
    return jnp.einsum("ncx,ndx->ncd", fv, fv,
                      precision=jax.lax.Precision.HIGHEST)


def _style_loss_ref(target_feats, current_feats, feed_dtype=None):
    loss = jnp.float32(0.0)
    for ft, fc in zip(target_feats, current_feats):
        loss = loss + jnp.mean(
            (_gram_ref(fc, feed_dtype) - _gram_ref(ft, feed_dtype)) ** 2)
    return loss


if __name__ == "__main__":
    key = jax.random.PRNGKey(0)
    keys = jax.random.split(key, 10)

    # Small max_tk so the small test shapes exercise multiple K steps, the
    # ragged-tail mask, Buffered(3), the triangle path and split-K.
    max_tk = 128

    shapes = [
        (2, 8, 16, 16),    # hw=256 -> 2 K steps
        (2, 8, 16, 32),    # hw=512 -> 4 K steps (triple-buffered F path)
        (2, 8, 12, 10),    # hw=120 -> ragged-tail lane masking
        (2, 256, 8, 20),   # C=256  -> upper-triangle Gram / fused loss
    ]
    target_features = [jax.random.normal(keys[i], s, dtype=jnp.float32)
                       for i, s in enumerate(shapes)]
    current_features = [jax.random.normal(keys[4 + i], s, dtype=jnp.float32)
                        for i, s in enumerate(shapes)]

    # --- default (bf16 MXU feed) path ------------------------------------
    module = StyleLossPallas(target_features, max_tk=max_tk)
    for feat, gram in zip(target_features, module.gram_matrix_list):
        ref = _gram_ref(feat, jnp.bfloat16)
        assert jnp.allclose(gram, ref, rtol=1e-3, atol=1e-3)

    loss = jax.block_until_ready(module(current_features))
    ref_loss = _style_loss_ref(target_features, current_features, jnp.bfloat16)
    assert jnp.allclose(loss, ref_loss, rtol=2e-3, atol=1e-3), (loss, ref_loss)

    # --- exact float32-feed path (one layer) ------------------------------
    g32 = gram_matrix_pallas(target_features[0], feed_dtype=None, max_tk=max_tk)
    assert jnp.allclose(g32, _gram_ref(target_features[0]), rtol=1e-3, atol=1e-2)
    l32 = style_layer_loss_pallas(current_features[0], g32, feed_dtype=None,
                                  max_tk=max_tk)
    l32_ref = jnp.mean((_gram_ref(current_features[0])
                        - _gram_ref(target_features[0])) ** 2)
    assert jnp.allclose(l32, l32_ref, rtol=1e-3, atol=1e-3), (l32, l32_ref)

    # --- batch-1 split-K path (dual-TensorCore chips) ----------------------
    b1_t = jax.random.normal(keys[8], (1, 8, 16, 20), dtype=jnp.float32)  # hw=320
    b1_c = jax.random.normal(keys[9], (1, 8, 16, 20), dtype=jnp.float32)
    g1 = gram_matrix_pallas(b1_t, max_tk=max_tk)
    assert jnp.allclose(g1, _gram_ref(b1_t, jnp.bfloat16), rtol=1e-3, atol=1e-3)
    l1 = jax.block_until_ready(style_layer_loss_pallas(b1_c, g1, max_tk=max_tk))
    l1_ref = jnp.mean((_gram_ref(b1_c, jnp.bfloat16)
                       - _gram_ref(b1_t, jnp.bfloat16)) ** 2)
    assert jnp.allclose(l1, l1_ref, rtol=2e-3, atol=1e-3), (l1, l1_ref)

    print("KERNEL_OK")
</pallas_src>

<mosaic_0001>
module attributes {stable_mosaic.version = 11 : i64} {
  func.func @kernel(%arg0: i32, %arg1: i32, %arg2: i32, %arg3: memref<1x8x128xf32, #tpu.memory_space<vmem>>, %arg4: memref<1x1x8x8xf32, #tpu.memory_space<vmem>>, %arg5: memref<8x8xf32, #tpu.memory_space<vmem>>) attributes {dimension_semantics = [#tpu.dimension_semantics<parallel>, #tpu.dimension_semantics<parallel>, #tpu.dimension_semantics<arbitrary>], iteration_bounds = array<i64: 1, 2, 2>, scalar_prefetch = 0 : i64, scratch_operands = 1 : i64, tpu.core_type = #tpu.core_type<tc>, window_params = [{transform_indices = @transform_0, window_bounds = array<i64: 1, 8, 128>}, {transform_indices = @transform_1, window_bounds = array<i64: 1, 1, 8, 8>}]} {
    %c2_i32 = arith.constant 2 : i32
    %0 = arith.muli %arg0, %c2_i32 : i32
    %1 = arith.addi %0, %arg2 : i32
    %c0_i32 = arith.constant 0 : i32
    %2 = arith.cmpi eq, %arg2, %c0_i32 : i32
    %3 = arith.extui %2 : i1 to i32
    %c0_i32_0 = arith.constant 0 : i32
    %4 = arith.cmpi ne, %3, %c0_i32_0 : i32
    scf.if %4 {
      %c0 = arith.constant 0 : index
      %c0_5 = arith.constant 0 : index
      %c0_6 = arith.constant 0 : index
      %13 = vector.load %arg3[%c0, %c0_5, %c0_6] : memref<1x8x128xf32, #tpu.memory_space<vmem>>, vector<1x8x128xf32>
      %14 = vector.shape_cast %13 : vector<1x8x128xf32> to vector<8x128xf32>
      %15 = arith.truncf %14 : vector<8x128xf32> to vector<8x128xbf16>
      %cst = arith.constant dense<0.000000e+00> : vector<8x8xf32>
      %16 = tpu.matmul %15, %15, %cst {dimension_numbers = #tpu.dot_dimension_numbers<[1], [1], [0], [0], [0, 0, 1, 0], [], []>} : vector<8x128xbf16>, vector<8x128xbf16>, vector<8x8xf32> -> vector<8x8xf32>
      %c0_7 = arith.constant 0 : index
      %c0_8 = arith.constant 0 : index
      %17 = vector.load %arg5[%c0_7, %c0_8] : memref<8x8xf32, #tpu.memory_space<vmem>>, vector<8x8xf32>
      tpu.vector_store %arg5[%c0_7, %c0_8], %16 {strides = array<i32>} : memref<8x8xf32, #tpu.memory_space<vmem>>, vector<8x8xf32>,
    } else {
    }
    %c0_i32_1 = arith.constant 0 : i32
    %5 = arith.cmpi sgt, %arg2, %c0_i32_1 : i32
    %c2_i32_2 = arith.constant 2 : i32
    %6 = arith.cmpi slt, %1, %c2_i32_2 : i32
    %7 = arith.andi %5, %6 : i1
    %8 = arith.extui %7 : i1 to i32
    %c0_i32_3 = arith.constant 0 : i32
    %9 = arith.cmpi ne, %8, %c0_i32_3 : i32
    scf.if %9 {
      %c0 = arith.constant 0 : index
      %c0_5 = arith.constant 0 : index
      %c0_6 = arith.constant 0 : index
      %13 = vector.load %arg3[%c0, %c0_5, %c0_6] : memref<1x8x128xf32, #tpu.memory_space<vmem>>, vector<1x8x128xf32>
      %14 = vector.shape_cast %13 : vector<1x8x128xf32> to vector<8x128xf32>
      %15 = arith.truncf %14 : vector<8x128xf32> to vector<8x128xbf16>
      %cst = arith.constant dense<0.000000e+00> : vector<8x8xf32>
      %16 = tpu.matmul %15, %15, %cst {dimension_numbers = #tpu.dot_dimension_numbers<[1], [1], [0], [0], [0, 0, 1, 0], [], []>} : vector<8x128xbf16>, vector<8x128xbf16>, vector<8x8xf32> -> vector<8x8xf32>
      %c0_7 = arith.constant 0 : index
      %c0_8 = arith.constant 0 : index
      %17 = vector.load %arg5[%c0_7, %c0_8] : memref<8x8xf32, #tpu.memory_space<vmem>>, vector<8x8xf32>
      %18 = arith.addf %17, %16 : vector<8x8xf32>
      %c0_9 = arith.constant 0 : index
      %c0_10 = arith.constant 0 : index
      %19 = vector.load %arg5[%c0_9, %c0_10] : memref<8x8xf32, #tpu.memory_space<vmem>>, vector<8x8xf32>
      tpu.vector_store %arg5[%c0_9, %c0_10], %18 {strides = array<i32>} : memref<8x8xf32, #tpu.memory_space<vmem>>, vector<8x8xf32>,
    } else {
    }
    %c1_i32 = arith.constant 1 : i32
    %10 = arith.cmpi eq, %arg2, %c1_i32 : i32
    %11 = arith.extui %10 : i1 to i32
    %c0_i32_4 = arith.constant 0 : i32
    %12 = arith.cmpi ne, %11, %c0_i32_4 : i32
    scf.if %12 {
      %c0 = arith.constant 0 : index
      %c0_5 = arith.constant 0 : index
      %13 = vector.load %arg5[%c0, %c0_5] : memref<8x8xf32, #tpu.memory_space<vmem>>, vector<8x8xf32>
      %c0_6 = arith.constant 0 : index
      %c0_7 = arith.constant 0 : index
      %c0_8 = arith.constant 0 : index
      %c0_9 = arith.constant 0 : index
      %14 = vector.load %arg4[%c0_6, %c0_7, %c0_8, %c0_9] : memref<1x1x8x8xf32, #tpu.memory_space<vmem>>, vector<1x1x8x8xf32>
      %15 = vector.shape_cast %14 : vector<1x1x8x8xf32> to vector<8x8xf32>
      %16 = vector.shape_cast %13 : vector<8x8xf32> to vector<1x1x8x8xf32>
      tpu.vector_store %arg4[%c0_6, %c0_7, %c0_8, %c0_9], %16 {strides = array<i32>} : memref<1x1x8x8xf32, #tpu.memory_space<vmem>>, vector<1x1x8x8xf32>,
    } else {
    }
    return
  }
  func.func @transform_0(%arg0: i32, %arg1: i32, %arg2: i32) -> (i32, i32, i32) {
    %c2_i32 = arith.constant 2 : i32
    %0 = arith.muli %arg0, %c2_i32 : i32
    %1 = arith.addi %0, %arg2 : i32
    %c1_i32 = arith.constant 1 : i32
    %2 = arith.minsi %1, %c1_i32 : i32
    %c0_i32 = arith.constant 0 : i32
    %c0_i32_0 = arith.constant 0 : i32
    return %arg1, %c0_i32, %2 : i32, i32, i32
  }
  func.func @transform_1(%arg0: i32, %arg1: i32, %arg2: i32) -> (i32, i32, i32, i32) {
    %c0_i32 = arith.constant 0 : i32
    %c0_i32_0 = arith.constant 0 : i32
    %c0_i32_1 = arith.constant 0 : i32
    return %arg0, %arg1, %c0_i32, %c0_i32_0 : i32, i32, i32, i32
  }
}

</mosaic_0001>

<bundles_post_ra>
// kernel: tpu_custom_call.1
= control target key start
LH: loop header
LB: loop body
LE: loop exit
PB: predicated region body
PF: predicated region fallthrough
CT: control target
= control target key end

     0   :  { %6 = vsyncpa [#allocation4], 0  ;;  %s935_s0 = inlined_call_operand.hbm [shape: f32[2,8,256], index: 0, kind: input, shape index: {}]   ;;  %s936_s1 = inlined_call_operand.hbm [shape: f32[1,2,8,8], index: 1, kind: output, shape index: {}]  }
   0x1   :  { %8 = vsyncpa [#allocation4 + $0x1], 0 }
   0x2   :  { %9 = vsyncpa [#allocation5], 0 }
   0x3   :  { %11 = vsyncpa [#allocation5 + $0x1], 0  ;;  %s695_s6 = smov 0   ;;  %s697_s7 = smov 0  }
   0x4   :  { %s699_s8 = smov 0   ;;  %s701_s9 = smov 0  }
   0x5   :  { %s703_s10 = smov 0   ;;  %s705_s11 = smov 0  }
   0x6   :  { %s707_s12 = smov 0   ;;  %s709_s13 = smov 0  }
   0x7   :  { %s711_s14 = smov 0   ;;  %s713_s15 = smov 0  }
   0x8   :  { %s715_s16 = smov 0  }
   0x9 LB: > { %s387_s17 = sadd.s32 4294967295, %s677_s16   ;;  %s388_s18 = sadd.s32 4294967294, %s677_s16   ;;  %s677_s16 = sphi %s715_s16, %s17_s16   ;;  %s673_s15 = sphi %s713_s15, %s959_s15   ;;  %s669_s14 = sphi %s711_s14, %s958_s14   ;;  %s665_s13 = sphi %s709_s13, %s957_s13   ;;  %s661_s12 = sphi %s707_s12, %s956_s12   ;;  %s657_s11 = sphi %s705_s11, %s955_s11   ;;  %s653_s10 = sphi %s703_s10, %s954_s10   ;;  %s649_s9 = sphi %s701_s9, %s953_s9   ;;  %s645_s8 = sphi %s699_s8, %s952_s8   ;;  %s641_s7 = sphi %s697_s7, %s951_s7   ;;  %s637_s6 = sphi %s695_s6, %s950_s6  }
   0xa   : > { %s29_s19 = sadd.s32 1, %s669_s14  ;;  %s32_s20 = sadd.s32 1, %s673_s15 }
   0xb   : > { %p30_p0 = scmp.ge.s32.totalorder %s29_s19, 2  ;;  %p42_p1 = scmp.lt.s32.totalorder %s669_s14, 1 }
   0xc   : > { %s53_s21 = sadd.s32 1, %s657_s11  ;;  %p60_p2 = scmp.ne.s32.totalorder %s657_s11, %s653_s10 }
   0xd   : > { %s961_s19 = smov (%p30_p0, %s29_s19), 0  ;;  %s963_s20 = smov (!%p30_p0, %s32_s20), %s673_s15 }
   0xe   : > { %s43_s22 = scalar_select %p42_p1, %s669_s14, 1 }
   0xf   : > { %p34_p3 = scmp.ge.s32.totalorder %s963_s20, 2  ;;  %p46_p4 = scmp.lt.s32.totalorder %s961_s19, 1 }
  0x10   : > { %p61_p5 = scmp.eq.s32.totalorder %s677_s16, 0  ;;  %p66_p6 = scmp.ne.s32.totalorder %s653_s10, %s649_s9 }
  0x11   : > { %s965_s20 = smov (%p34_p3, %s963_s20), 0  ;;  %p67_p8 = scmp.eq.s32.totalorder %s387_s17, 0 }
  0x12   : > { %939 = sst [smem:[#allocation9_spill]] %s965_s20  ;;  %s48_s24 = ssub.s32 %s673_s15, %s965_s20 }
  0x13   : > { %s47_s23 = scalar_select %p46_p4, %s961_s19, 1 }
  0x14   : > { %p771_p7 = por %p61_p5, %p60_p2  ;;  %p79_p9 = scmp.eq.s32.totalorder %s48_s24, 0 }
  0x15   : > { %s49_s26 = ssub.s32 %s43_s22, %s47_s23  ;;  %p777_p11 = por %p67_p8, %p66_p6 }
  0x16   : > { %s50_s27 = sor.u32 %s49_s26, %s48_s24  ;;  %s81_s29 = sadd.s32 1, %s645_s8 }
  0x17   : > { %p51_p10 = scmp.eq.s32.totalorder %s50_s27, 0  ;;  %p91_p12 = scmp.ne.s32.totalorder %s645_s8, %s641_s7 }
  0x18   : > { %s788_s2 = scalar_select %p79_p9, %s645_s8, %s81_s29  }
  0x19   : > { %s785_s30 = scalar_select %p51_p10, %s657_s11, %s53_s21  }
  0x1a   : > { %p92_p13 = scmp.eq.s32.totalorder %s387_s17, 3  ;;  %p97_p0 = scmp.ne.s32.totalorder %s641_s7, %s637_s6 }
  0x1b   : > { %p98_p1 = scmp.eq.s32.totalorder %s388_s18, 3  ;;  %p431_p3 = scmp.lt.s32.totalorder %s677_s16, 4 }
  0x1c   : > { %p796_p2 = por %p92_p13, %p91_p12  ;;  %s118_s5 = sand.u32 1, %s657_s11  }
  0x1d   : > { %p801_p4 = por %p98_p1, %p97_p0  ;;  %s391_s9 = sshll.u32 %s118_s5, 3 }
  0x1e   : > { %s942_s3 = scalar_select %p796_p2, 1, 0 }
  0x1f   : > { %s943_s4 = scalar_select %p801_p4, 1, 0 }
  0x20   : > { %s392_s21 = sshll.u32 %s673_s15, 1  ;;  %s122_s24 = scalar_lea.vmem [#allocation3], %s391_s9 }
  0x21   : > { %s131_s23 = sadd.s32 %s392_s21, %s43_s22  ;;  %s135_s17 = sshll.u32 %s122_s24, 4  ;;  %s807_s17 = int_to_ptr.vmem [resolvable:$true] %s135_s17 }
  0x22   : > { %s393_s26 = sshll.u32 %s131_s23, 7  ;;  %p816_p5 = pnand %p431_p3, %p771_p7 }
  0x23   : > { %s812_s29 = scalar_lea.hbm %s935_s0, %s393_s26  ;;  %s119_s22 = scalar_lea.sflag [#allocation4], %s118_s5 }
  0x24   : > { %s525_s9 = scalar_lea.hbm %s812_s29, 128  ;;  %p527_p10 = pneg %p816_p5 }
  0x25   : > { %p526_p9 = scmp.ne.s32.totalorder %s812_s29, %s525_s9  ;;  %s530_s23 = scalar_lea.hbm %s935_s0, 512 }
  0x26   : > { %p531_p7 = scmp.lt.u32.totalorder %s812_s29, %s935_s0  ;;  %p532_p0 = scmp.lt.u32.totalorder %s530_s23, %s525_s9 }
  0x27   : > { %p528_p12 = pnand %p527_p10, %p526_p9  ;;  %p534_p3 = scmp.lt.u32.totalorder %s525_s9, %s812_s29 }
  0x28   : > { %p533_p1 = por %p532_p0, %p531_p7 }
  0x29   : > { %p529_p13 = pneg %p528_p12 }
  0x2a   : > { %p535_p6 = por %p534_p3, %p533_p1 }
  0x2c   : > { %p536_p8 = pnand %p535_p6, %p529_p13 }
  0x2e   : > { %539 = shalt.err (!%p536_p8)
}
  0x2f   : > { %s540_s5 = scalar_lea.vmem %s807_s17, 128  ;;  %s679_s27 = smov [#allocation3]  }
  0x30   : > { %p541_p9 = scmp.ne.s32.totalorder %s807_s17, %s540_s5  ;;  %s545_s18 = sshll.u32 %s679_s27, 4  ;;  %s546_s18 = int_to_ptr.vmem [resolvable:$false] %s545_s18 }
  0x31   : > { %s547_s25 = scalar_lea.vmem %s546_s18, 256  ;;  %p548_p2 = scmp.lt.s32.totalorder %s807_s17, %s546_s18 }
  0x32   : > { %p543_p12 = pnand %p541_p9, %p527_p10  ;;  %p549_p7 = scmp.lt.s32.totalorder %s547_s25, %s540_s5 }
  0x34   : > { %p544_p4 = pneg %p543_p12  ;;  %p550_p0 = por %p549_p7, %p548_p2 }
  0x36   : > { %p551_p1 = pnand %p550_p0, %p544_p4 }
  0x38   : > { %554 = shalt.err (!%p551_p1)
}
  0x39   : > { %426 = dma.hbm_to_vmem [thread:$0]  (!%p816_p5), %s812_s29, 128, %s807_s17, %s119_s22  }
  0x3a   : > { %p945_p6 = scmp.lt.s32.totalorder %s677_s16, 5  ;;  %p946_p8 = scmp.ge.s32.totalorder %s677_s16, 1 }
  0x3c   : > { %p141_p10 = pnand %p946_p8, %p945_p6 }
  0x3d   : > { %s146_s9 = sand.u32 (!%p141_p10), 1, %s653_s10  }
  0x3e   : > { %144 = sbr.rel (%p141_p10) target bundleno = 558 (0x22e), region = 24  ;;  %s852_s21 = sshll.u32 (!%p141_p10), %s146_s9, 3 }
  0x3f   : > { %s147_s23 = scalar_lea.sflag (!%p141_p10), [#allocation4], %s146_s9  ;;  %s150_s24 = scalar_lea.vmem (!%p141_p10), [#allocation3], %s852_s21 }
  0x45   : > { %628 = dma.done.wait (%p777_p11), %s147_s23, 128  }
  0x46   : > { %630 = vsyncadd (%p777_p11), %s147_s23, 4294967168  ;;  %s166_s20 = sand.u32 1, %s641_s7   ;;  %p397_p2 = scmp.ne.s32.totalorder %s661_s12, 0 }
  0x47   : > { %s862_s17 = sshll.u32 %s166_s20, 3  ;;  %v180_v0 = vld [vmem:[%s150_s24] sm:$0xff] (!%p397_p2)  ;;  %v680_v1 = vmov (!%p397_p2), 0.0   ;;  %vm681_vm0 = vmmov (!%p397_p2), 0   ;;  %vm222_vm1 = vcmask (!%p397_p2), 64512  }
  0x48   : > { %s168_s29 = scalar_lea.vmem [#allocation6], %s862_s17  ;;  %179 = sbr.rel (%p397_p2) target bundleno = 296 (0x128), region = 32  ;;  %407 = vmatprep.subr.bf16.mxu0 (!%p397_p2), %v680_v1  ;;  %v181_v2 = vpack.c.bf16 (!%p397_p2), %v180_v0, %v180_v0  ;;  %409 = vmatprep.mubr.msk.bf16.mxu0 (!%p397_p2), %vm681_vm0, %v680_v1 }
  0x4a   : > { %408 = vmatpush3.bf16.xpose.msra.mxu0 (!%p397_p2), %v181_v2 }
  0x51   : > { %410 = vmatmul.mubr.bf16.vlgmr.msra.gmra.mrb[0].mxu0 %v181_v2 }
 0x124   : > { %v216_v3 = vpop.f32.mrb[0].mxu0 }
 0x125   : > { %223 = vst.msk [vmem:[#allocation2] sm:$0xff] %vm222_vm1, %v216_v3  ;;  %v411_v4 = vpop.f32.mrb[1].mxu0 }
 0x126   : > { %v219_v5 = vpop.f32.mrb[2].mxu0 }
 0x127   : > { %v412_v6 = vpop.f32.mrb[3].mxu0 }
 0x128 PF: > { %p224_p11 = scmp.gt.s32.totalorder %s661_s12, 0  ;;  %p225_p4 = scmp.lt.s32.totalorder %s661_s12, 2 }
 0x12a   : > { %p226_p5 = pnand %p225_p4, %p224_p11 }
 0x12b   : > { %v230_v7 = vld [vmem:[%s150_s24] sm:$0xff] (!%p226_p5)  ;;  %v682_v8 = vmov (!%p226_p5), 0.0   ;;  %vm683_vm2 = vmmov (!%p226_p5), 0   ;;  %vm274_vm3 = vcmask (!%p226_p5), 64512  }
 0x12c   : > { %229 = sbr.rel (%p226_p5) target bundleno = 524 (0x20c), region = 36  ;;  %413 = vmatprep.subr.bf16.mxu0 (!%p226_p5), %v682_v8  ;;  %v231_v9 = vpack.c.bf16 (!%p226_p5), %v230_v7, %v230_v7  ;;  %415 = vmatprep.mubr.msk.bf16.mxu0 (!%p226_p5), %vm683_vm2, %v682_v8  ;;  %v272_v10 = vld [vmem:[#allocation2] sm:$0xff] (!%p226_p5) }
 0x12e   : > { %414 = vmatpush3.bf16.xpose.msra.mxu0 (!%p226_p5), %v231_v9 }
 0x135   : > { %416 = vmatmul.mubr.bf16.vlgmr.msra.gmra.mrb[0].mxu0 %v231_v9 }
 0x208   : > { %v266_v11 = vpop.f32.mrb[0].mxu0 }
 0x209   : > { %v273_v12 = vadd.f32 %v272_v10, %v266_v11  ;;  %v417_v13 = vpop.f32.mrb[1].mxu0 }
 0x20a   : > { %v269_v14 = vpop.f32.mrb[2].mxu0 }
 0x20b   : > { %275 = vst.msk [vmem:[#allocation2] sm:$0xff] %vm274_vm3, %v273_v12  ;;  %v418_v15 = vpop.f32.mrb[3].mxu0 }
 0x20c PF: > { %p398_p13 = scmp.ne.s32.totalorder %s661_s12, 1 }
 0x20d   : > { %vm281_vm4 = vcmask (!%p398_p13), 64512  }
 0x20e   : > { %279 = sbr.rel (%p398_p13) target bundleno = 533 (0x215), region = 40 }
 0x212   : > { %v280_v16 = vld [vmem:[#allocation2] sm:$0xff] (!%p398_p13) }
 0x213   : > { %282 = vst.msk [vmem:[%s168_s29] sm:$0xff] (!%p398_p13), %vm281_vm4, %v280_v16 }
 0x215 PF: > { %s400_s28 = sshll.u32 %s665_s13, 7  ;;  %s299_s27 = sshll.u32 %s168_s29, 4  ;;  %s300_s27 = int_to_ptr.vmem [resolvable:$true] %s299_s27 }
 0x216   : > { %s875_s5 = scalar_lea.hbm %s936_s1, %s400_s28  ;;  %s284_s12 = scalar_lea.sflag [#allocation5], %s166_s20 }
 0x217   : > { %s555_s18 = scalar_lea.vmem %s300_s27, 128  ;;  %p947_p9 = scmp.ne.s32.totalorder %s942_s3, 0 }
 0x218   : > { %p556_p3 = scmp.ne.s32.totalorder %s300_s27, %s555_s18  ;;  %s684_s25 = smov [#allocation6]  }
 0x219   : > { %s559_s9 = sshll.u32 %s684_s25, 4  ;;  %s560_s9 = int_to_ptr.vmem [resolvable:$false] %s559_s9 }
 0x21a   : > { %p557_p12 = pnand %p556_p3, %p947_p9  ;;  %s561_s21 = scalar_lea.vmem %s560_s9, 256 }
 0x21b   : > { %p562_p0 = scmp.lt.s32.totalorder %s300_s27, %s560_s9  ;;  %p563_p1 = scmp.lt.s32.totalorder %s561_s21, %s555_s18 }
 0x21c   : > { %p558_p7 = pneg %p557_p12 }
 0x21d   : > { %p564_p6 = por %p563_p1, %p562_p0 }
 0x21f   : > { %p565_p8 = pnand %p564_p6, %p558_p7 }
 0x221   : > { %568 = shalt.err (!%p565_p8)
}
 0x222   : > { %s569_s13 = scalar_lea.hbm %s875_s5, 128  ;;  %s573_s20 = scalar_lea.hbm %s936_s1, 256 }
 0x223   : > { %p570_p10 = scmp.ne.s32.totalorder %s875_s5, %s569_s13  ;;  %p574_p4 = scmp.lt.u32.totalorder %s875_s5, %s936_s1 }
 0x224   : > { %p575_p5 = scmp.lt.u32.totalorder %s573_s20, %s569_s13  ;;  %p577_p3 = scmp.lt.u32.totalorder %s569_s13, %s875_s5 }
 0x225   : > { %p571_p2 = pnand %p570_p10, %p947_p9 }
 0x226   : > { %p576_p13 = por %p575_p5, %p574_p4 }
 0x227   : > { %p572_p11 = pneg %p571_p2 }
 0x228   : > { %p578_p12 = por %p577_p3, %p576_p13 }
 0x22a   : > { %p579_p7 = pnand %p578_p12, %p572_p11 }
 0x22c   : > { %582 = shalt.err (!%p579_p7)
}
 0x22d   : > { %421 = dma.vmem_to_hbm [thread:$0]  (%p947_p9), %s300_s27, 128, %s875_s5, %s284_s12  }
 0x22e PF: > { %p432_p0 = scmp.ge.s32.totalorder %s677_s16, 2  ;;  %s311_s28 = sand.u32 1, %s637_s6  }
 0x22f   : > { %p948_p1 = scmp.ne.s32.totalorder %s943_s4, 0  ;;  %s312_s22 = scalar_lea.sflag [#allocation5], %s311_s28 }
 0x231   : > { %p428_p6 = pnand %p432_p0, %p948_p1 }
 0x233   : > { %632 = dma.done.wait (!%p428_p6), %s312_s22, 128  }
 0x234   : > { %634 = vsyncadd (!%p428_p6), %s312_s22, 4294967168  ;;  %s17_s16 = sadd.s32 1, %s677_s16   ;;  %s949_s3 = sld [smem:[#allocation9_spill]] }
 0x235   : > { %p14_p8 = scmp.ge.s32.totalorder %s17_s16, 6   ;;  %s950_s6 = smov %s641_s7 }
 0x236   : > { %s951_s7 = smov %s645_s8  ;;  %s952_s8 = smov %s788_s2 }
 0x237   : > { %s953_s9 = smov %s653_s10  ;;  %s954_s10 = smov %s657_s11 }
 0x238   : > { %s955_s11 = smov %s785_s30  ;;  %s956_s12 = smov %s669_s14 }
 0x239   : > { %s957_s13 = smov %s673_s15  ;;  %s958_s14 = smov %s961_s19 }
 0x23a   : > { %s959_s15 = smov %s949_s3  ;;  %16 = sbr.rel (!%p14_p8) target bundleno = 9 (0x9), region = 81 }
 0x241   :  { %317 = vsyncpa [#allocation4], 1 }
 0x242   :  { %319 = vsyncpa [#allocation4 + $0x1], 1 }
 0x243   :  { %320 = vsyncpa [#allocation5], 1 }
 0x244   :  { %322 = vsyncpa [#allocation5 + $0x1], 1 }

</bundles_post_ra>
